<compile_context>
chip_gen: v6e
topology: v6e:2x2x1
jax: 0.10.0
libtpu: 0.0.40
codegen_flags: <defaults>
</compile_context>

<pallas_src>
import math
import jax
import jax.numpy as jnp
from jax.experimental import pallas as pl
from jax.experimental.pallas import tpu as pltpu


# ----------------------------------------------------------------------------- kernel
def _conditioner_kernel(frames_ref, w_ref, b_ref, lat_ref):
    # frames_ref : [1, C, TL, R]  bf16  (one batch element, one time tile of latent-rate frames)
    # w_ref      : [C, R, F]      bf16  (fused encoder @ proj_out weights, per effective channel)
    # b_ref      : [1, F]         f32   (fused bias, lane-dense F=128)
    # lat_ref    : [1, TL, F]     f32
    C = frames_ref.shape[1]

    # first channel assigns, remaining channels accumulate (no zeros-init broadcast)
    out = jnp.dot(frames_ref[0, 0], w_ref[0], preferred_element_type=jnp.float32)
    for c in range(1, C):  # io_channels is tiny and static -> unrolled
        out = out + jnp.dot(frames_ref[0, c], w_ref[c], preferred_element_type=jnp.float32)

    lat_ref[0] = (out + b_ref[...]).astype(lat_ref.dtype)   # 128-lane dense store


# ----------------------------------------------------------------------------- helpers
def set_audio_channels(audio, target_channels):
    """jnp port of stable_audio_tools.data.utils.set_audio_channels (audio: [B, C, T]).
    Used only by the pure-JAX reference; the kernel path folds this into the weights."""
    if target_channels == 1 and audio.shape[1] > 1:
        audio = jnp.mean(audio, axis=1, keepdims=True)
    elif target_channels == 2:
        if audio.shape[1] == 1:
            audio = jnp.concatenate([audio, audio], axis=1)
        elif audio.shape[1] > 2:
            audio = audio[:, :2, :]
    return audio


def init_params(key, *, io_channels=2, downsampling_ratio=128,
                encoded_channels=64, output_dim=128, project_out=False):
    """One-time parameter construction + fusing/packing (hoisted out of the forward path)."""
    kw, kb, kpw, kpb = jax.random.split(key, 4)
    R, E, F = downsampling_ratio, encoded_channels, output_dim

    fan_in = io_channels * R
    w_enc = jax.random.normal(kw, (io_channels, R, E), jnp.float32) / math.sqrt(fan_in)
    b_enc = jax.random.uniform(kb, (E,), jnp.float32, -1.0, 1.0) / math.sqrt(fan_in)

    if E != F or project_out:            # Conditioner: Linear(dim, output_dim)
        bound = 1.0 / math.sqrt(E)
        w_proj = jax.random.uniform(kpw, (E, F), jnp.float32, -bound, bound)
        b_proj = jax.random.uniform(kpb, (F,), jnp.float32, -bound, bound)
    else:                                # proj_out == nn.Identity
        w_proj = jnp.eye(E, dtype=jnp.float32)
        b_proj = jnp.zeros((F,), jnp.float32)

    # ---- fold proj_out into the (linear) stand-in encoder, in f32 ----
    w_fused = jnp.einsum("cre,ef->crf", w_enc, w_proj)           # [C_io, R, F] f32
    b_fused = (b_enc @ w_proj + b_proj).reshape(1, F)            # [1, F] f32, lane-dense

    return {
        "io_channels": io_channels, "downsampling_ratio": R,
        "encoded_channels": E, "output_dim": F,
        # fused kernel operands (f32 master copy; bf16 cast happens after channel folding)
        "w_fused_f32": w_fused,
        "b_fused": b_fused,
        # f32 originals kept only for the in-script two-stage reference check
        "ref_w_enc": w_enc, "ref_b_enc": b_enc,
        "ref_w_proj": w_proj, "ref_b_proj": b_proj,
    }


# ----------------------------------------------------------------------------- forward
def pretransform_conditioner_forward(audio, params):
    """Returns [latents [B, L, output_dim], ones [B, latents.shape[2]]] (literal module return)."""
    # torch.stack(audio, dim=0) / audio.unsqueeze(0)
    if isinstance(audio, (list, tuple)):
        audio = jnp.stack(audio, axis=0)
    if audio.ndim == 2:
        audio = audio[None]

    io = params["io_channels"]
    R = params["downsampling_ratio"]
    F = params["output_dim"]
    B, C_in, T = audio.shape
    L = T // R

    # ---- set_audio_channels folded into the fused weights (no audio HBM pass) ----
    w_fused = params["w_fused_f32"]                              # [io, R, F] f32
    if io == 1 and C_in > 1:
        C_eff = C_in                                             # mean over channels == scaled weights
        w_eff = jnp.broadcast_to(w_fused[0] / float(C_in), (C_in, R, F))
    elif io == 2 and C_in == 1:
        C_eff = 1                                                # mono->stereo dup == summed weight slabs
        w_eff = (w_fused[0] + w_fused[1])[None]
    elif io == 2 and C_in >= 2:
        C_eff = 2                                                # C_in > 2: BlockSpec window reads ch 0..1 only
        w_eff = w_fused
    else:
        C_eff = min(C_in, io)
        w_eff = w_fused[:C_eff]
    w_eff = w_eff.astype(jnp.bfloat16)                           # single cast after f32 folding
    b_fused = params["b_fused"]                                  # [1, F] f32

    # contiguous view of audio as latent-rate frames; bf16 halves the dominant HBM stream
    # TODO(synk): ideally the caller hands us bf16 audio so this cast pass disappears entirely.
    frames = audio[..., :L * R].reshape(B, C_in, L, R).astype(jnp.bfloat16)

    # ---- time tiling: bounded VMEM + pipelining; cap chosen for v7x's 64 MiB VMEM ----
    TL_CAP = 1024   # 2 bufs * (C*TL*R*2B + TL*F*4B) + weights  ~  2 MiB  <<  32 MiB scoped
    TL = L if L <= TL_CAP else TL_CAP
    grid = (B, pl.cdiv(L, TL))

    flops = 2 * B * L * C_eff * R * F
    bytes_accessed = (B * C_eff * L * R * 2 + C_eff * R * F * 2
                      + F * 4 + B * L * F * 4)

    latents = pl.pallas_call(
        _conditioner_kernel,
        out_shape=jax.ShapeDtypeStruct((B, L, F), jnp.float32),
        grid=grid,
        in_specs=[
            pl.BlockSpec((1, C_eff, TL, R), lambda b, l: (b, 0, l, 0)),
            pl.BlockSpec((C_eff, R, F),     lambda b, l: (0, 0, 0)),
            pl.BlockSpec((1, F),            lambda b, l: (0, 0)),
        ],
        out_specs=pl.BlockSpec((1, TL, F), lambda b, l: (b, l, 0)),
        compiler_params=pltpu.CompilerParams(
            dimension_semantics=("parallel", "parallel"),
            vmem_limit_bytes=32 * 1024 * 1024),
        cost_estimate=pl.CostEstimate(flops=flops, transcendentals=0,
                                      bytes_accessed=bytes_accessed),
    )(frames, w_eff, b_fused)

    # constant mask: emitted host-side instead of burning a kernel output
    ones = jnp.ones((latents.shape[0], latents.shape[2]), latents.dtype)
    return [latents, ones]


# ----------------------------------------------------------------------------- reference
def _reference(audio, params):
    """Pure-JAX f32 two-stage reference of the same forward (same stand-in encoder, unfused)."""
    if isinstance(audio, (list, tuple)):
        audio = jnp.stack(audio, axis=0)
    if audio.ndim == 2:
        audio = audio[None]
    audio = set_audio_channels(audio, params["io_channels"]).astype(jnp.float32)
    R = params["downsampling_ratio"]
    B, C, T = audio.shape
    L = T // R
    frames = audio[..., :L * R].reshape(B, C, L, R)
    h = jnp.einsum("bclr,cre->ble", frames, params["ref_w_enc"]) + params["ref_b_enc"]
    lat = h @ params["ref_w_proj"] + params["ref_b_proj"]
    ones = jnp.ones((lat.shape[0], lat.shape[2]), lat.dtype)
    return lat, ones


# ----------------------------------------------------------------------------- main
if __name__ == "__main__":
    key = jax.random.PRNGKey(0)
    k_param, k_data = jax.random.split(key)

    io_channels = 2           # pretransform.io_channels
    downsampling_ratio = 128  # latent frame hop of the stand-in encoder
    encoded_channels = 64     # pretransform.encoded_channels (== Conditioner.dim)
    output_dim = 128          # Conditioner.output_dim -> proj_out is a real Linear

    params = init_params(k_param,
                         io_channels=io_channels,
                         downsampling_ratio=downsampling_ratio,
                         encoded_channels=encoded_channels,
                         output_dim=output_dim)

    B, C_in, T = 2, 2, 4096   # small stereo clip -> L = 32 latent frames
    audio = jax.random.uniform(k_data, (B, C_in, T), jnp.float32, -1.0, 1.0)

    latents, ones = pretransform_conditioner_forward(audio, params)
    jax.block_until_ready(latents)
    jax.block_until_ready(ones)

    ref_lat, ref_ones = _reference(audio, params)
    L = T // downsampling_ratio
    assert latents.shape == (B, L, output_dim)
    assert ones.shape == (B, latents.shape[2])
    assert jnp.allclose(latents, ref_lat, atol=5e-2, rtol=5e-2)   # bf16-MXU / f32-acc tolerance
    assert jnp.allclose(ones, ref_ones)

    print("KERNEL_OK")
</pallas_src>

<mosaic_0001>
module attributes {stable_mosaic.version = 11 : i64} {
  func.func @_conditioner_kernel(%arg0: i32, %arg1: i32, %arg2: memref<1x2x32x128xbf16, #tpu.memory_space<vmem>>, %arg3: memref<2x128x128xbf16, #tpu.memory_space<vmem>>, %arg4: memref<1x128xf32, #tpu.memory_space<vmem>>, %arg5: memref<1x32x128xf32, #tpu.memory_space<vmem>>) attributes {dimension_semantics = [#tpu.dimension_semantics<parallel>, #tpu.dimension_semantics<parallel>], iteration_bounds = array<i64: 2, 1>, scalar_prefetch = 0 : i64, scratch_operands = 0 : i64, tpu.core_type = #tpu.core_type<tc>, window_params = [{transform_indices = @transform_0, window_bounds = array<i64: 1, 2, 32, 128>}, {pipeline_mode = #tpu.pipeline_mode<synchronous>, transform_indices = @transform_1, window_bounds = array<i64: 2, 128, 128>}, {pipeline_mode = #tpu.pipeline_mode<synchronous>, transform_indices = @transform_2, window_bounds = array<i64: 1, 128>}, {transform_indices = @transform_3, window_bounds = array<i64: 1, 32, 128>}]} {
    %c0 = arith.constant 0 : index
    %c0_0 = arith.constant 0 : index
    %c0_1 = arith.constant 0 : index
    %c0_2 = arith.constant 0 : index
    %0 = vector.load %arg2[%c0, %c0_0, %c0_1, %c0_2] : memref<1x2x32x128xbf16, #tpu.memory_space<vmem>>, vector<1x1x32x128xbf16>
    %1 = vector.shape_cast %0 : vector<1x1x32x128xbf16> to vector<32x128xbf16>
    %c0_3 = arith.constant 0 : index
    %c0_4 = arith.constant 0 : index
    %c0_5 = arith.constant 0 : index
    %2 = vector.load %arg3[%c0_3, %c0_4, %c0_5] : memref<2x128x128xbf16, #tpu.memory_space<vmem>>, vector<1x128x128xbf16>
    %3 = vector.shape_cast %2 : vector<1x128x128xbf16> to vector<128x128xbf16>
    %cst = arith.constant dense<0.000000e+00> : vector<32x128xf32>
    %4 = tpu.matmul %1, %3, %cst {dimension_numbers = #tpu.dot_dimension_numbers<[1], [0], [0], [1], [0, 0, 1, 1], [], []>} : vector<32x128xbf16>, vector<128x128xbf16>, vector<32x128xf32> -> vector<32x128xf32>
    %c0_6 = arith.constant 0 : index
    %c1 = arith.constant 1 : index
    %c0_7 = arith.constant 0 : index
    %c0_8 = arith.constant 0 : index
    %5 = vector.load %arg2[%c0_6, %c1, %c0_7, %c0_8] : memref<1x2x32x128xbf16, #tpu.memory_space<vmem>>, vector<1x1x32x128xbf16>
    %6 = vector.shape_cast %5 : vector<1x1x32x128xbf16> to vector<32x128xbf16>
    %c1_9 = arith.constant 1 : index
    %c0_10 = arith.constant 0 : index
    %c0_11 = arith.constant 0 : index
    %7 = vector.load %arg3[%c1_9, %c0_10, %c0_11] : memref<2x128x128xbf16, #tpu.memory_space<vmem>>, vector<1x128x128xbf16>
    %8 = vector.shape_cast %7 : vector<1x128x128xbf16> to vector<128x128xbf16>
    %cst_12 = arith.constant dense<0.000000e+00> : vector<32x128xf32>
    %9 = tpu.matmul %6, %8, %cst_12 {dimension_numbers = #tpu.dot_dimension_numbers<[1], [0], [0], [1], [0, 0, 1, 1], [], []>} : vector<32x128xbf16>, vector<128x128xbf16>, vector<32x128xf32> -> vector<32x128xf32>
    %10 = arith.addf %4, %9 : vector<32x128xf32>
    %c0_13 = arith.constant 0 : index
    %c0_14 = arith.constant 0 : index
    %11 = vector.load %arg4[%c0_13, %c0_14] : memref<1x128xf32, #tpu.memory_space<vmem>>, vector<1x128xf32>
    %12 = vector.broadcast %11 : vector<1x128xf32> to vector<32x128xf32>
    %13 = arith.addf %10, %12 : vector<32x128xf32>
    %c0_15 = arith.constant 0 : index
    %c0_16 = arith.constant 0 : index
    %c0_17 = arith.constant 0 : index
    %14 = vector.load %arg5[%c0_15, %c0_16, %c0_17] : memref<1x32x128xf32, #tpu.memory_space<vmem>>, vector<1x32x128xf32>
    %15 = vector.shape_cast %14 : vector<1x32x128xf32> to vector<32x128xf32>
    %16 = vector.shape_cast %13 : vector<32x128xf32> to vector<1x32x128xf32>
    tpu.vector_store %arg5[%c0_15, %c0_16, %c0_17], %16 {strides = array<i32>} : memref<1x32x128xf32, #tpu.memory_space<vmem>>, vector<1x32x128xf32>,
    return
  }
  func.func @transform_0(%arg0: i32, %arg1: i32) -> (i32, i32, i32, i32) {
    %c0_i32 = arith.constant 0 : i32
    %c0_i32_0 = arith.constant 0 : i32
    %c0_i32_1 = arith.constant 0 : i32
    return %arg0, %c0_i32, %arg1, %c0_i32_0 : i32, i32, i32, i32
  }
  func.func @transform_1(%arg0: i32, %arg1: i32) -> (i32, i32, i32) {
    %c0_i32 = arith.constant 0 : i32
    %c0_i32_0 = arith.constant 0 : i32
    %c0_i32_1 = arith.constant 0 : i32
    %c0_i32_2 = arith.constant 0 : i32
    return %c0_i32, %c0_i32_0, %c0_i32_1 : i32, i32, i32
  }
  func.func @transform_2(%arg0: i32, %arg1: i32) -> (i32, i32) {
    %c0_i32 = arith.constant 0 : i32
    %c0_i32_0 = arith.constant 0 : i32
    %c0_i32_1 = arith.constant 0 : i32
    return %c0_i32, %c0_i32_0 : i32, i32
  }
  func.func @transform_3(%arg0: i32, %arg1: i32) -> (i32, i32, i32) {
    %c0_i32 = arith.constant 0 : i32
    %c0_i32_0 = arith.constant 0 : i32
    return %arg0, %arg1, %c0_i32 : i32, i32, i32
  }
}

</mosaic_0001>

<bundles_post_ra>
// kernel: tpu_custom_call.1
= control target key start
LH: loop header
LB: loop body
LE: loop exit
PB: predicated region body
PF: predicated region fallthrough
CT: control target
= control target key end

     0   :  { %8 = vsyncpa [#allocation3], 0  ;;  %s1181_s0 = inlined_call_operand.hbm [shape: bf16[2,2,32,128], index: 0, kind: input, shape index: {}]   ;;  %s1182_s1 = inlined_call_operand.hbm [shape: bf16[2,128,128], index: 1, kind: input, shape index: {}]   ;;  %s1183_s2 = inlined_call_operand.vmem [shape: f32[1,128], index: 2, kind: input, shape index: {}]   ;;  %s1184_s3 = inlined_call_operand.hbm [shape: f32[2,32,128], index: 3, kind: output, shape index: {}]  }
   0x1   :  { %10 = vsyncpa [#allocation3 + $0x1], 0 }
   0x2   :  { %11 = vsyncpa [#allocation6], 0 }
   0x3   :  { %12 = vsyncpa [#allocation4], 0 }
   0x4   :  { %14 = vsyncpa [#allocation4 + $0x1], 0  ;;  %s981_s12 = smov 0   ;;  %s983_s13 = smov 0  }
   0x5   :  { %s985_s14 = smov 0   ;;  %s987_s15 = smov 0  }
   0x6   :  { %s989_s16 = smov 0   ;;  %s991_s17 = smov 0  }
   0x7 LB: > { %s613_s18 = sadd.s32 4294967295, %s952_s17   ;;  %s614_s19 = sadd.s32 4294967294, %s952_s17   ;;  %s952_s17 = sphi %s991_s17, %s20_s17   ;;  %s948_s16 = sphi %s989_s16, %s1206_s16   ;;  %s944_s15 = sphi %s987_s15, %s1205_s15   ;;  %s940_s14 = sphi %s985_s14, %s1204_s14   ;;  %s936_s13 = sphi %s983_s13, %s1203_s13   ;;  %s932_s12 = sphi %s981_s12, %s1202_s12  }
   0x8   : > { %p54_p0 = scmp.ne.s32.totalorder %s936_s13, %s932_s12  ;;  %p1015_p1 = scmp.eq.s32.totalorder %s613_s18, 0 }
   0x9   : > { %p1019_p2 = scmp.eq.s32.totalorder %s613_s18, 1  ;;  %p128_p3 = scmp.eq.s32.totalorder %s614_s19, 1 }
   0xa   : > { %p1025_p4 = por %p1015_p1, %p54_p0  ;;  %p615_p5 = scmp.ge.s32.totalorder %s952_s17, 1 }
   0xb   : > { %p1030_p6 = por %p128_p3, %p54_p0  ;;  %p135_p7 = scmp.lt.s32.totalorder %s952_s17, 3 }
   0xc   : > { %s1190_s22 = scalar_select %p1025_p4, 1, 0 }
   0xd   : > { %s1191_s23 = scalar_select %p1030_p6, 1, 0 }
   0xe   : > { %p1035_p8 = pnand %p615_p5, %p135_p7  ;;  %s954_s25 = smov [#allocation5]  }
   0xf   : > { %s147_s26 = sshll.u32 %s954_s25, 4  ;;  %s32_s28 = sadd.s32 1, %s948_s16  ;;  %s148_s26 = int_to_ptr.vmem [resolvable:$true] %s147_s26 }
  0x10   : > { %p725_p9 = pneg %p1035_p8  ;;  %s825_s29 = scalar_lea.vmem %s148_s26, 2048 }
  0x11   : > { %p826_p13 = scmp.ne.s32.totalorder %s148_s26, %s825_s29  ;;  %p833_p5 = scmp.lt.s32.totalorder %s148_s26, %s148_s26 }
  0x12   : > { %p1044_p11 = pnand %p725_p9, %p1015_p1  ;;  %p834_p7 = scmp.lt.s32.totalorder %s825_s29, %s825_s29 }
  0x14   : > { %p816_p12 = pneg %p1044_p11  ;;  %p835_p6 = por %p834_p7, %p833_p5 }
  0x16   : > { %p828_p0 = pnand %p826_p13, %p816_p12 }
  0x18   : > { %p829_p3 = pneg %p828_p0 }
  0x1a   : > { %p836_p4 = pnand %p835_p6, %p829_p3 }
  0x1c   : > { %839 = shalt.err (!%p836_p4)
}
  0x1d   : > { %s1186_s30 = smov 64   ;;  %s1187_s4 = smov 4  }
  0x1e   : > { %728 = dma.hbm_to_vmem [thread:$0]  (!%p1044_p11), %s1182_s1, 2048, %s148_s26, [#allocation6], %s1186_s30, %s1186_s30, %s1187_s4  }
  0x1f   : > { %p34_p4 = scmp.ge.s32.totalorder %s32_s28, 2  ;;  %s41_s7 = sadd.s32 1, %s940_s14 }
  0x20   : > { %p48_p6 = scmp.ne.s32.totalorder %s940_s14, %s936_s13  ;;  %p49_p9 = scmp.eq.s32.totalorder %s952_s17, 0 }
  0x21   : > { %s1208_s28 = smov (%p34_p4, %s32_s28), 0  ;;  %p738_p0 = scmp.lt.s32.totalorder %s952_s17, 2 }
  0x22   : > { %p1065_p12 = por %p49_p9, %p48_p6  ;;  %p1071_p13 = por %p1019_p2, %p48_p6 }
  0x23   : > { %s36_s10 = ssub.s32 %s948_s16, %s1208_s28  ;;  %s164_s11 = sand.u32 1, %s940_s14  }
  0x24   : > { %p39_p11 = scmp.eq.s32.totalorder %s36_s10, 0  ;;  %s618_s18 = sshll.u32 %s164_s11, 5 }
  0x25   : > { %s655_s25 = sshll.u32 %s948_s16, 9  ;;  %s168_s5 = scalar_lea.vmem [#allocation2], %s618_s18 }
  0x26   : > { %s1080_s19 = scalar_select %p39_p11, %s940_s14, %s41_s7  }
  0x27   : > { %s176_s29 = scalar_lea.hbm %s1181_s0, %s655_s25  ;;  %s177_s6 = sshll.u32 %s168_s5, 4  ;;  %s178_s6 = int_to_ptr.vmem [resolvable:$true] %s177_s6 }
  0x28   : > { %p1088_p2 = pnand %p738_p0, %p1065_p12  ;;  %s165_s30 = scalar_lea.sflag [#allocation3], %s164_s11 }
  0x29   : > { %s853_s10 = scalar_lea.vmem %s178_s6, 512  ;;  %s957_s7 = smov [#allocation2]  }
  0x2a   : > { %p842_p3 = pneg %p1088_p2  ;;  %p854_p5 = scmp.ne.s32.totalorder %s178_s6, %s853_s10 }
  0x2b   : > { %s858_s4 = sshll.u32 %s957_s7, 4  ;;  %s859_s4 = int_to_ptr.vmem [resolvable:$false] %s858_s4 }
  0x2c   : > { %p856_p7 = pnand %p854_p5, %p842_p3  ;;  %s860_s25 = scalar_lea.vmem %s859_s4, 1024 }
  0x2d   : > { %p861_p6 = scmp.lt.s32.totalorder %s178_s6, %s859_s4  ;;  %p862_p9 = scmp.lt.s32.totalorder %s860_s25, %s853_s10 }
  0x2e   : > { %p857_p4 = pneg %p856_p7 }
  0x2f   : > { %p863_p11 = por %p862_p9, %p861_p6 }
  0x31   : > { %p864_p10 = pnand %p863_p11, %p857_p4 }
  0x33   : > { %867 = shalt.err (!%p864_p10)
}
  0x34   : > { %s1197_s8 = smov 4   ;;  %s1198_s18 = smov 64  }
  0x35   : > { %732 = dma.hbm_to_vmem [thread:$0]  (!%p1088_p2), %s176_s29, 512, %s178_s6, %s165_s30, %s1198_s18, %s1198_s18, %s1197_s8  }
  0x36   : > { %189 = sbr.rel (%p1035_p8) target bundleno = 313 (0x139), region = 32  ;;  %s1102_s11 = sand.u32 (!%p1035_p8), 1, %s936_s13  }
  0x37   : > { %s622_s4 = sshll.u32 (!%p1035_p8), %s1102_s11, 5  ;;  %s192_s26 = scalar_lea.sflag (!%p1035_p8), [#allocation3], %s1102_s11 }
  0x38   : > { %s1108_s27 = scalar_lea.vmem (!%p1035_p8), [#allocation2], %s622_s4  ;;  %p1199_p10 = scmp.ne.s32.totalorder (!%p1035_p8), %s1190_s22, 0 }
  0x3b   : > { %919 = dma.done.wait (%p1199_p10), %s192_s26, 512  }
  0x3c   : > { %921 = vsyncadd (%p1199_p10), %s192_s26, 4294966784 }
  0x3d   : > { %923 = dma.done.wait (%p1015_p1), [#allocation6], 2048  }
  0x3e   : > { %925 = vsyncadd (%p1015_p1), [#allocation6], 4294965248  ;;  %v794_v0 = vld [vmem:[#allocation5 + $0x78] sm:$0xff]   ;;  %v796_v2 = vld [vmem:[#allocation5 + $0x70] sm:$0xff]   ;;  %s221_s24 = scalar_lea.vmem [#allocation7], %s622_s4  ;;  %s656_s29 = sshll.u32 %s944_s15, 9 }
  0x3f   : > { %v795_v1 = vld [vmem:[#allocation5 + $0x38] sm:$0xff]   ;;  %677 = vmatprep.subr.bf16.mxu0 %v794_v0  ;;  %v797_v3 = vld [vmem:[#allocation5 + $0x30] sm:$0xff]   ;;  %v798_v4 = vld [vmem:[#allocation5 + $0x68] sm:$0xff]   ;;  %s516_s30 = sshll.u32 %s221_s24, 4  ;;  %s1133_s21 = scalar_lea.hbm %s1184_s3, %s656_s29  ;;  %s1128_s30 = int_to_ptr.vmem [resolvable:$true] %s516_s30 }
  0x40   : > { %697 = vmatprep.subr.bf16.mxu1 %v795_v1  ;;  %678 = vmatpush3.bf16.msra.mxu0 %v794_v0  ;;  %v799_v5 = vld [vmem:[#allocation5 + $0x28] sm:$0xff]   ;;  %v800_v6 = vld [vmem:[#allocation5 + $0x60] sm:$0xff]   ;;  %v802_v8 = vld [vmem:[#allocation5 + $0x58] sm:$0xff]   ;;  %s501_s10 = scalar_lea.sflag [#allocation4], %s1102_s11  ;;  %s868_s7 = scalar_lea.vmem %s1128_s30, 512 }
  0x41   : > { %698 = vmatpush3.bf16.msra.mxu1 %v795_v1  ;;  %679 = vmatprep.subr.bf16.mxu0 %v796_v2  ;;  %v801_v7 = vld [vmem:[#allocation5 + $0x20] sm:$0xff]   ;;  %v803_v9 = vld [vmem:[#allocation5 + $0x18] sm:$0xff]   ;;  %v804_v10 = vld [vmem:[#allocation5 + $0x50] sm:$0xff]   ;;  %p869_p1 = scmp.ne.s32.totalorder %s1128_s30, %s868_s7  ;;  %s958_s15 = smov [#allocation7]  }
  0x42   : > { %699 = vmatprep.subr.bf16.mxu1 %v797_v3  ;;  %v805_v11 = vld [vmem:[#allocation5 + $0x10] sm:$0xff]   ;;  %v811_v13 = vld [vmem:[%s1108_s27] sm:$0xff]   ;;  %v806_v14 = vld [vmem:[#allocation5 + $0x48] sm:$0xff]   ;;  %s872_s25 = sshll.u32 %s958_s15, 4  ;;  %s873_s25 = int_to_ptr.vmem [resolvable:$false] %s872_s25 }
  0x43   : > { %v810_v12 = vld [vmem:[%s1108_s27 + $0x10] sm:$0xff]   ;;  %713 = vmatprep.mubr.bf16.mxu1 %v811_v13  ;;  %v807_v15 = vld [vmem:[#allocation5 + $0x8] sm:$0xff]   ;;  %v808_v16 = vld [vmem:[#allocation5 + $0x40] sm:$0xff]   ;;  %p870_p8 = pnand %p869_p1, %p1071_p13  ;;  %s874_s8 = scalar_lea.vmem %s873_s25, 1024 }
  0x44   : > { %680 = vmatpush3.bf16.msra.mxu0 %v796_v2  ;;  %693 = vmatprep.mubr.bf16.mxu0 %v810_v12  ;;  %v809_v17 = vld [vmem:[#allocation5] sm:$0xff]   ;;  %v812_v18 = vld [vmem:[%s1108_s27 + $0x18] sm:$0xff]   ;;  %v813_v19 = vld [vmem:[%s1108_s27 + $0x8] sm:$0xff]   ;;  %p875_p0 = scmp.lt.s32.totalorder %s1128_s30, %s873_s25  ;;  %p876_p2 = scmp.lt.s32.totalorder %s874_s8, %s868_s7 }
  0x45   : > { %700 = vmatpush3.bf16.msra.mxu1 %v797_v3  ;;  %681 = vmatprep.subr.bf16.mxu0 %v798_v4  ;;  %v649_v22 = vld [vmem:[%s1183_s2] ss:$0 sm:$0xff]  ;;  %p871_p12 = pneg %p870_p8 }
  0x46   : > { %701 = vmatprep.subr.bf16.mxu1 %v799_v5  ;;  %p877_p3 = por %p876_p2, %p875_p0 }
  0x48   : > { %682 = vmatpush3.bf16.msra.mxu0 %v798_v4  ;;  %p878_p5 = pnand %p877_p3, %p871_p12 }
  0x49   : > { %702 = vmatpush3.bf16.msra.mxu1 %v799_v5  ;;  %683 = vmatprep.subr.bf16.mxu0 %v800_v6 }
  0x4a   : > { %703 = vmatprep.subr.bf16.mxu1 %v801_v7 }
  0x4c   : > { %684 = vmatpush3.bf16.msra.mxu0 %v800_v6 }
  0x4d   : > { %704 = vmatpush3.bf16.msra.mxu1 %v801_v7  ;;  %685 = vmatprep.subr.bf16.mxu0 %v802_v8 }
  0x4e   : > { %705 = vmatprep.subr.bf16.mxu1 %v803_v9 }
  0x50   : > { %686 = vmatpush3.bf16.msra.mxu0 %v802_v8 }
  0x51   : > { %706 = vmatpush3.bf16.msra.mxu1 %v803_v9  ;;  %687 = vmatprep.subr.bf16.mxu0 %v804_v10 }
  0x52   : > { %707 = vmatprep.subr.bf16.mxu1 %v805_v11 }
  0x54   : > { %688 = vmatpush3.bf16.msra.mxu0 %v804_v10 }
  0x55   : > { %708 = vmatpush3.bf16.msra.mxu1 %v805_v11  ;;  %689 = vmatprep.subr.bf16.mxu0 %v806_v14 }
  0x56   : > { %709 = vmatprep.subr.bf16.mxu1 %v807_v15 }
  0x58   : > { %690 = vmatpush3.bf16.msra.mxu0 %v806_v14 }
  0x59   : > { %710 = vmatpush3.bf16.msra.mxu1 %v807_v15  ;;  %691 = vmatprep.subr.bf16.mxu0 %v808_v16 }
  0x5a   : > { %711 = vmatprep.subr.bf16.mxu1 %v809_v17 }
  0x5c   : > { %692 = vmatpush3.bf16.msra.mxu0 %v808_v16 }
  0x5d   : > { %712 = vmatpush3.bf16.msra.mxu1 %v809_v17 }
  0x5f   : > { %694 = vmatmul.mubr.bf16.vlgmr.msra.gmra.mxu0 %v812_v18 }
  0x60   : > { %714 = vmatmul.mubr.bf16.vlgmr.msra.gmra.mxu1 %v813_v19 }
 0x11f   : > { %v695_v20 = vpop.f32.mrf.mxu0 }
 0x120   : > { %v715_v21 = vpop.f32.mrf.mxu1 }
 0x121   : > { %v479_v23 = vadd.f32 %v715_v21, %v695_v20  ;;  %v361_v24 = vpop.f32.mrf.mxu0 }
 0x122   : > { %v470_v25 = vpop.f32.mrf.mxu1 }
 0x123   : > { %v494_v26 = vadd.f32 %v649_v22, %v479_v23  ;;  %v471_v27 = vadd.f32 %v470_v25, %v361_v24  ;;  %v696_v28 = vpop.f32.mrf.mxu0 }
 0x124   : > { %v716_v29 = vpop.f32.mrf.mxu1 }
 0x125   : > { %498 = vst [vmem:[%s221_s24 + $0x10] sm:$0xff] %v494_v26  ;;  %v492_v30 = vadd.f32 %v649_v22, %v471_v27  ;;  %v482_v31 = vadd.f32 %v716_v29, %v696_v28  ;;  %v364_v32 = vpop.f32.mrf.mxu0 }
 0x126   : > { %v473_v33 = vpop.f32.mrf.mxu1 }
 0x127   : > { %496 = vst [vmem:[%s221_s24] sm:$0xff] %v492_v30  ;;  %v495_v34 = vadd.f32 %v649_v22, %v482_v31  ;;  %v474_v35 = vadd.f32 %v473_v33, %v364_v32 }
 0x129   : > { %499 = vst [vmem:[%s221_s24 + $0x18] sm:$0xff] %v495_v34  ;;  %v493_v36 = vadd.f32 %v649_v22, %v474_v35 }
 0x12b   : > { %497 = vst [vmem:[%s221_s24 + $0x8] sm:$0xff] %v493_v36 }
 0x12c   : > { %881 = shalt.err (!%p878_p5)
}
 0x12d   : > { %s882_s18 = scalar_lea.hbm %s1133_s21, 512  ;;  %s886_s27 = scalar_lea.hbm %s1184_s3, 1024 }
 0x12e   : > { %p883_p7 = scmp.ne.s32.totalorder %s1133_s21, %s882_s18  ;;  %p887_p9 = scmp.lt.s32.totalorder %s1133_s21, %s1184_s3 }
 0x12f   : > { %p888_p11 = scmp.lt.s32.totalorder %s886_s27, %s882_s18 }
 0x130   : > { %p884_p4 = pnand %p883_p7, %p1071_p13 }
 0x131   : > { %p889_p10 = por %p888_p11, %p887_p9 }
 0x132   : > { %p885_p6 = pneg %p884_p4 }
 0x134   : > { %p890_p1 = pnand %p889_p10, %p885_p6 }
 0x136   : > { %893 = shalt.err (!%p890_p1)
}
 0x137   : > { %s959_s24 = smov 128   ;;  %s960_s29 = smov 8  }
 0x138   : > { %723 = dma.vmem_to_hbm [thread:$0]  (%p1071_p13), %s1128_s30, 512, %s1133_s21, %s501_s10, %s959_s24, %s959_s24, %s960_s29  }
 0x139 PF: > { %s531_s5 = sand.u32 1, %s932_s12   ;;  %p1200_p8 = scmp.ne.s32.totalorder %s1191_s23, 0 }
 0x13a   : > { %p1201_p12 = scmp.ge.s32.totalorder %s952_s17, 2  ;;  %s532_s6 = scalar_lea.sflag [#allocation4], %s531_s5 }
 0x13c   : > { %p734_p0 = pnand %p1201_p12, %p1200_p8 }
 0x13e   : > { %p735_p2 = pneg %p734_p0 }
 0x140   : > { %927 = dma.done.wait (%p735_p2), %s532_s6, 512  }
 0x141   : > { %929 = vsyncadd (%p735_p2), %s532_s6, 4294966784  ;;  %s20_s17 = sadd.s32 1, %s952_s17   ;;  %s1202_s12 = smov %s936_s13 }
 0x142   : > { %p17_p3 = scmp.ge.s32.totalorder %s20_s17, 4   ;;  %s1203_s13 = smov %s940_s14 }
 0x143   : > { %s1204_s14 = smov %s1080_s19  ;;  %s1205_s15 = smov %s948_s16 }
 0x144   : > { %s1206_s16 = smov %s1208_s28  ;;  %19 = sbr.rel (!%p17_p3) target bundleno = 7 (0x7), region = 83 }
 0x149   :  { %537 = vsyncpa [#allocation3], 1 }
 0x14a   :  { %539 = vsyncpa [#allocation3 + $0x1], 1 }
 0x14b   :  { %540 = vsyncpa [#allocation6], 1 }
 0x14c   :  { %541 = vsyncpa [#allocation4], 1 }
 0x14d   :  { %543 = vsyncpa [#allocation4 + $0x1], 1 }

</bundles_post_ra>
